<compile_context>
chip_gen: v5e
topology: v5e:2x2
jax: 0.10.0
libtpu: 0.0.40
codegen_flags: <defaults>
</compile_context>

<pallas_src>
import functools

import jax
import jax.numpy as jnp
from jax.experimental import pallas as pl
from jax.experimental.pallas import tpu as pltpu


# ----------------------------------------------------------------------------- kernel
def _rendering_mlp_kernel(*refs, n_layers, squeeze_out):
    # refs = [x_t (Kp, tile) bf16,
    #         w0 (H, Kp) bf16,     b0 (H, 1) f32,
    #         w1 (H, H)  bf16,     b1 (H, 1) f32,  ...,
    #         w_last (d_out, H) bf16, b_last (d_out, 1) f32,
    #         o_ref (d_out, tile) f32]
    x_ref = refs[0]
    o_ref = refs[-1]
    wbs = refs[1:-1]
    assert len(wbs) == 2 * n_layers

    # Lane-dense activations: rows (rays/points) live on lanes, features on
    # sublanes.  h starts as the bf16 input block (Kp, tile).
    h = x_ref[...]
    for l in range(n_layers):
        w_ref = wbs[2 * l]
        b_ref = wbs[2 * l + 1]
        h = jnp.dot(w_ref[...], h.astype(w_ref.dtype),
                    preferred_element_type=jnp.float32)   # (out_l, tile) f32
        h = h + b_ref[...]                                 # (out_l, 1) column bias
        if l < n_layers - 1:
            h = jnp.maximum(h, 0.0)                        # ReLU, f32 VPU
    if squeeze_out:
        h = jax.nn.sigmoid(h)                              # EUP, f32
    o_ref[...] = h.astype(o_ref.dtype)                     # lane-dense store


# ----------------------------------------------------------------------------- glue
def _weight_norm_effective(v, g):
    # nn.utils.weight_norm on Linear: W[o, :] = g[o] * v[o, :] / ||v[o, :]||
    # (no epsilon, matching PyTorch; all-zero rows would NaN there too).
    norm = jnp.sqrt(jnp.sum(v * v, axis=1, keepdims=True))
    return (g[:, None] * v) / norm


def prepare_rendering_params(params, *, operand_dtype=jnp.bfloat16, k_multiple=16):
    """Fold weight norm ONCE and lay weights out for the lane-dense kernel:
      every layer: W kept (out, in) in `operand_dtype`, bias as (out, 1) f32.
      Layer 0's contraction dim is zero-padded up to a multiple of `k_multiple`
      (16 -> clean bf16 sublane tiling); the wrapper pads the packed input to
      the same width, so the extra columns contribute exactly zero.
    """
    assert len(params) >= 2
    layers = []
    for l, (v, g, b) in enumerate(params):
        w = _weight_norm_effective(v.astype(jnp.float32), g.astype(jnp.float32))
        if l == 0:
            k = w.shape[1]
            k_pad = ((k + k_multiple - 1) // k_multiple) * k_multiple
            if k_pad > k:
                w = jnp.pad(w, ((0, 0), (0, k_pad - k)))
        layers.append((w.astype(operand_dtype),
                       b.astype(jnp.float32)[:, None]))
    return layers


def _num_tensorcores_per_chip():
    # Generation-aware gating: only v7x has 2 TensorCores per chip.
    try:
        kind = jax.devices()[0].device_kind.lower()
        if "v7" in kind or "7x" in kind:
            return 2
    except Exception:  # pragma: no cover - defensive
        pass
    return 1


def _pick_tile(n_rows, tile_n):
    assert n_rows % 128 == 0, "pad the row count to a multiple of 128"
    tile = max(128, min(tile_n, n_rows))
    # Keep >=2 grid steps only where a second TensorCore can use them (v7x);
    # on single-TC chips a small N runs as one big step (no fixed-cost doubling).
    if _num_tensorcores_per_chip() >= 2 and n_rows >= 256:
        tile = min(tile, n_rows // 2)
    tile = max(128, (tile // 128) * 128)
    while n_rows % tile:
        tile -= 128
    return tile


def rendering_network_forward(points, normals, view_dirs, feature_vectors, prepped,
                              *, mode="idr", squeeze_out=True, tile_n=8192,
                              operand_dtype=jnp.bfloat16, return_transposed=False):
    """prepped: output of prepare_rendering_params (weight-norm already folded).
    Returns (N, d_out) f32 like the PyTorch module (or (d_out, N) if
    return_transposed=True, which skips the wrapper-side transpose)."""
    # TODO(synk): multires_view > 0 positional embedding of view_dirs not
    #             implemented (module default multires_view=0 -> identity).
    if mode == "idr":
        parts = (points, view_dirs, normals, feature_vectors)
    elif mode == "no_view_dir":
        parts = (points, normals, feature_vectors)
    elif mode == "no_normal":
        parts = (points, view_dirs, feature_vectors)
    else:
        raise ValueError(mode)

    n_layers = len(prepped)
    assert n_layers >= 2
    w0 = prepped[0][0]
    k_pad = w0.shape[1]

    # One fused XLA copy: concat + zero-pad(K->Kp) + bf16 cast + transpose.
    x = jnp.concatenate(parts, axis=-1)                      # (N, K) f32
    k_raw = x.shape[1]
    assert 0 <= k_pad - k_raw < 16, "prepared W0 padding does not match mode"
    if k_pad > k_raw:
        x = jnp.pad(x, ((0, 0), (0, k_pad - k_raw)))
    x_t = x.astype(operand_dtype).T                          # (Kp, N) bf16

    n_rows = x_t.shape[1]
    tile = _pick_tile(n_rows, tile_n)
    d_out = prepped[-1][0].shape[0]

    # ---- flat args + specs ---------------------------------------------------
    flat_args = [x_t]
    in_specs = [pl.BlockSpec((k_pad, tile), lambda i: (0, i))]
    for w, b in prepped:
        flat_args += [w, b]
        in_specs += [pl.BlockSpec(w.shape, lambda i: (0, 0)),   # grid-resident
                     pl.BlockSpec(b.shape, lambda i: (0, 0))]

    kernel = functools.partial(_rendering_mlp_kernel,
                               n_layers=n_layers, squeeze_out=squeeze_out)

    # Advisory cost estimate so XLA can overlap the packing copy / transpose.
    flops = 0
    weight_bytes = 0
    for w, b in prepped:
        flops += 2 * n_rows * w.shape[0] * w.shape[1]
        weight_bytes += w.size * w.dtype.itemsize + b.size * b.dtype.itemsize
    cost = pl.CostEstimate(
        flops=flops,
        transcendentals=(n_rows * d_out if squeeze_out else 0),
        bytes_accessed=x_t.size * x_t.dtype.itemsize + weight_bytes
        + n_rows * d_out * 4)

    out_t = pl.pallas_call(
        kernel,
        out_shape=jax.ShapeDtypeStruct((d_out, n_rows), jnp.float32),
        grid=(n_rows // tile,),
        in_specs=in_specs,
        out_specs=pl.BlockSpec((d_out, tile), lambda i: (0, i)),  # lane-dense
        compiler_params=pltpu.CompilerParams(
            dimension_semantics=("parallel",)),
        cost_estimate=cost,
    )(*flat_args)

    if return_transposed:
        return out_t            # (d_out, N), no extra HBM round trip
    return out_t.T              # module layout (N, d_out)


# ----------------------------------------------------------------------------- reference
def _reference_forward(points, normals, view_dirs, feature_vectors, params,
                       *, mode="idr", squeeze_out=True):
    if mode == "idr":
        x = jnp.concatenate([points, view_dirs, normals, feature_vectors], axis=-1)
    elif mode == "no_view_dir":
        x = jnp.concatenate([points, normals, feature_vectors], axis=-1)
    else:
        x = jnp.concatenate([points, view_dirs, feature_vectors], axis=-1)
    n_lin = len(params)
    for l, (v, g, b) in enumerate(params):
        w = _weight_norm_effective(v, g)
        x = x @ w.T + b
        if l < n_lin - 1:
            x = jnp.maximum(x, 0.0)
    if squeeze_out:
        x = jax.nn.sigmoid(x)
    return x


# ----------------------------------------------------------------------------- demo
if __name__ == "__main__":
    # Module-consistent config.
    d_feature, d_in, d_out, d_hidden, n_layers = 32, 9, 3, 32, 2
    mode, squeeze_out = "idr", True
    dims = [d_in + d_feature] + [d_hidden] * n_layers + [d_out]   # [41, 32, 32, 3]

    N = 1024  # small demo row count (multiple of 128)
    key = jax.random.PRNGKey(0)
    k_pts, k_nrm, k_view, k_feat, k_par = jax.random.split(key, 5)

    points = jax.random.normal(k_pts, (N, 3), dtype=jnp.float32)
    normals = jax.random.normal(k_nrm, (N, 3), dtype=jnp.float32)
    view_dirs = jax.random.normal(k_view, (N, 3), dtype=jnp.float32)
    feature_vectors = jax.random.normal(k_feat, (N, d_feature), dtype=jnp.float32)

    # Deterministic (v, g, b) per layer, PyTorch weight shapes (out, in).
    params = []
    pkeys = jax.random.split(k_par, len(dims) - 1)
    for l in range(len(dims) - 1):
        in_dim, out_dim = dims[l], dims[l + 1]
        kv, kg, kb = jax.random.split(pkeys[l], 3)
        bound = float(in_dim) ** -0.5
        v = jax.random.uniform(kv, (out_dim, in_dim), jnp.float32, -bound, bound)
        g = 1.0 + 0.1 * jax.random.normal(kg, (out_dim,), jnp.float32)
        b = jax.random.uniform(kb, (out_dim,), jnp.float32, -bound, bound)
        params.append((v, g, b))

    # Hoisted once per parameter set (weight-norm fold, pad, cast).
    prepped = prepare_rendering_params(params, operand_dtype=jnp.bfloat16)

    fwd = jax.jit(functools.partial(rendering_network_forward,
                                    mode=mode, squeeze_out=squeeze_out,
                                    tile_n=8192))
    out = fwd(points, normals, view_dirs, feature_vectors, prepped)
    out = jax.block_until_ready(out)

    ref = _reference_forward(points, normals, view_dirs, feature_vectors, params,
                             mode=mode, squeeze_out=squeeze_out)
    assert out.shape == (N, d_out)
    # bf16 matmul operands with f32 accumulation -> relaxed tolerance vs f32 ref.
    assert jnp.allclose(out, ref, rtol=2e-2, atol=2e-2), "mismatch vs reference"

    print("KERNEL_OK")
</pallas_src>

<mosaic_0001>
module attributes {stable_mosaic.version = 11 : i64} {
  func.func @_rendering_mlp_kernel(%arg0: i32, %arg1: memref<48x1024xbf16, #tpu.memory_space<vmem>>, %arg2: memref<32x48xbf16, #tpu.memory_space<vmem>>, %arg3: memref<32x1xf32, #tpu.memory_space<vmem>>, %arg4: memref<32x32xbf16, #tpu.memory_space<vmem>>, %arg5: memref<32x1xf32, #tpu.memory_space<vmem>>, %arg6: memref<3x32xbf16, #tpu.memory_space<vmem>>, %arg7: memref<3x1xf32, #tpu.memory_space<vmem>>, %arg8: memref<3x1024xf32, #tpu.memory_space<vmem>>) attributes {dimension_semantics = [#tpu.dimension_semantics<parallel>], iteration_bounds = array<i64: 1>, scalar_prefetch = 0 : i64, scratch_operands = 0 : i64, tpu.core_type = #tpu.core_type<tc>, window_params = [{transform_indices = @transform_0, window_bounds = array<i64: 48, 1024>}, {pipeline_mode = #tpu.pipeline_mode<synchronous>, transform_indices = @transform_1, window_bounds = array<i64: 32, 48>}, {pipeline_mode = #tpu.pipeline_mode<synchronous>, transform_indices = @transform_2, window_bounds = array<i64: 32, 1>}, {pipeline_mode = #tpu.pipeline_mode<synchronous>, transform_indices = @transform_3, window_bounds = array<i64: 32, 32>}, {pipeline_mode = #tpu.pipeline_mode<synchronous>, transform_indices = @transform_4, window_bounds = array<i64: 32, 1>}, {pipeline_mode = #tpu.pipeline_mode<synchronous>, transform_indices = @transform_5, window_bounds = array<i64: 3, 32>}, {pipeline_mode = #tpu.pipeline_mode<synchronous>, transform_indices = @transform_6, window_bounds = array<i64: 3, 1>}, {transform_indices = @transform_7, window_bounds = array<i64: 3, 1024>}]} {
    %c0 = arith.constant 0 : index
    %c0_0 = arith.constant 0 : index
    %0 = vector.load %arg1[%c0, %c0_0] : memref<48x1024xbf16, #tpu.memory_space<vmem>>, vector<48x1024xbf16>
    %c0_1 = arith.constant 0 : index
    %c0_2 = arith.constant 0 : index
    %1 = vector.load %arg2[%c0_1, %c0_2] : memref<32x48xbf16, #tpu.memory_space<vmem>>, vector<32x48xbf16>
    %cst = arith.constant dense<0.000000e+00> : vector<32x1024xf32>
    %2 = tpu.matmul %1, %0, %cst {dimension_numbers = #tpu.dot_dimension_numbers<[1], [0], [0], [1], [0, 0, 1, 1], [], []>} : vector<32x48xbf16>, vector<48x1024xbf16>, vector<32x1024xf32> -> vector<32x1024xf32>
    %c0_3 = arith.constant 0 : index
    %c0_4 = arith.constant 0 : index
    %3 = vector.load %arg3[%c0_3, %c0_4] : memref<32x1xf32, #tpu.memory_space<vmem>>, vector<32x1xf32>
    %4 = vector.broadcast %3 : vector<32x1xf32> to vector<32x1024xf32>
    %5 = arith.addf %2, %4 : vector<32x1024xf32>
    %cst_5 = arith.constant 0.000000e+00 : f32
    %6 = vector.broadcast %cst_5 : f32 to vector<32x1024xf32>
    %7 = arith.maximumf %5, %6 : vector<32x1024xf32>
    %c0_6 = arith.constant 0 : index
    %c0_7 = arith.constant 0 : index
    %8 = vector.load %arg4[%c0_6, %c0_7] : memref<32x32xbf16, #tpu.memory_space<vmem>>, vector<32x32xbf16>
    %9 = arith.truncf %7 : vector<32x1024xf32> to vector<32x1024xbf16>
    %cst_8 = arith.constant dense<0.000000e+00> : vector<32x1024xf32>
    %10 = tpu.matmul %8, %9, %cst_8 {dimension_numbers = #tpu.dot_dimension_numbers<[1], [0], [0], [1], [0, 0, 1, 1], [], []>} : vector<32x32xbf16>, vector<32x1024xbf16>, vector<32x1024xf32> -> vector<32x1024xf32>
    %c0_9 = arith.constant 0 : index
    %c0_10 = arith.constant 0 : index
    %11 = vector.load %arg5[%c0_9, %c0_10] : memref<32x1xf32, #tpu.memory_space<vmem>>, vector<32x1xf32>
    %12 = vector.broadcast %11 : vector<32x1xf32> to vector<32x1024xf32>
    %13 = arith.addf %10, %12 : vector<32x1024xf32>
    %cst_11 = arith.constant 0.000000e+00 : f32
    %14 = vector.broadcast %cst_11 : f32 to vector<32x1024xf32>
    %15 = arith.maximumf %13, %14 : vector<32x1024xf32>
    %c0_12 = arith.constant 0 : index
    %c0_13 = arith.constant 0 : index
    %16 = vector.load %arg6[%c0_12, %c0_13] : memref<3x32xbf16, #tpu.memory_space<vmem>>, vector<3x32xbf16>
    %17 = arith.truncf %15 : vector<32x1024xf32> to vector<32x1024xbf16>
    %cst_14 = arith.constant dense<0.000000e+00> : vector<3x1024xf32>
    %18 = tpu.matmul %16, %17, %cst_14 {dimension_numbers = #tpu.dot_dimension_numbers<[1], [0], [0], [1], [0, 0, 1, 1], [], []>} : vector<3x32xbf16>, vector<32x1024xbf16>, vector<3x1024xf32> -> vector<3x1024xf32>
    %c0_15 = arith.constant 0 : index
    %c0_16 = arith.constant 0 : index
    %19 = vector.load %arg7[%c0_15, %c0_16] : memref<3x1xf32, #tpu.memory_space<vmem>>, vector<3x1xf32>
    %20 = vector.broadcast %19 : vector<3x1xf32> to vector<3x1024xf32>
    %21 = arith.addf %18, %20 : vector<3x1024xf32>
    %22 = arith.negf %21 : vector<3x1024xf32>
    %23 = math.exp %22 : vector<3x1024xf32>
    %cst_17 = arith.constant 1.000000e+00 : f32
    %24 = vector.broadcast %cst_17 : f32 to vector<3x1024xf32>
    %25 = arith.addf %24, %23 : vector<3x1024xf32>
    %26 = arith.divf %24, %25 : vector<3x1024xf32>
    %c0_18 = arith.constant 0 : index
    %c0_19 = arith.constant 0 : index
    %27 = vector.load %arg8[%c0_18, %c0_19] : memref<3x1024xf32, #tpu.memory_space<vmem>>, vector<3x1024xf32>
    tpu.vector_store %arg8[%c0_18, %c0_19], %26 {strides = array<i32>} : memref<3x1024xf32, #tpu.memory_space<vmem>>, vector<3x1024xf32>,
    return
  }
  func.func @transform_0(%arg0: i32) -> (i32, i32) {
    %c0_i32 = arith.constant 0 : i32
    %c0_i32_0 = arith.constant 0 : i32
    return %c0_i32, %arg0 : i32, i32
  }
  func.func @transform_1(%arg0: i32) -> (i32, i32) {
    %c0_i32 = arith.constant 0 : i32
    %c0_i32_0 = arith.constant 0 : i32
    %c0_i32_1 = arith.constant 0 : i32
    return %c0_i32, %c0_i32_0 : i32, i32
  }
  func.func @transform_2(%arg0: i32) -> (i32, i32) {
    %c0_i32 = arith.constant 0 : i32
    %c0_i32_0 = arith.constant 0 : i32
    %c0_i32_1 = arith.constant 0 : i32
    return %c0_i32, %c0_i32_0 : i32, i32
  }
  func.func @transform_3(%arg0: i32) -> (i32, i32) {
    %c0_i32 = arith.constant 0 : i32
    %c0_i32_0 = arith.constant 0 : i32
    %c0_i32_1 = arith.constant 0 : i32
    return %c0_i32, %c0_i32_0 : i32, i32
  }
  func.func @transform_4(%arg0: i32) -> (i32, i32) {
    %c0_i32 = arith.constant 0 : i32
    %c0_i32_0 = arith.constant 0 : i32
    %c0_i32_1 = arith.constant 0 : i32
    return %c0_i32, %c0_i32_0 : i32, i32
  }
  func.func @transform_5(%arg0: i32) -> (i32, i32) {
    %c0_i32 = arith.constant 0 : i32
    %c0_i32_0 = arith.constant 0 : i32
    %c0_i32_1 = arith.constant 0 : i32
    return %c0_i32, %c0_i32_0 : i32, i32
  }
  func.func @transform_6(%arg0: i32) -> (i32, i32) {
    %c0_i32 = arith.constant 0 : i32
    %c0_i32_0 = arith.constant 0 : i32
    %c0_i32_1 = arith.constant 0 : i32
    return %c0_i32, %c0_i32_0 : i32, i32
  }
  func.func @transform_7(%arg0: i32) -> (i32, i32) {
    %c0_i32 = arith.constant 0 : i32
    %c0_i32_0 = arith.constant 0 : i32
    return %c0_i32, %arg0 : i32, i32
  }
}

</mosaic_0001>

<bundles_post_ra>
// kernel: rendering_network_forward.1
= control target key start
LH: loop header
LB: loop body
LE: loop exit
PB: predicated region body
PF: predicated region fallthrough
CT: control target
= control target key end

     0   :  { %vm210_vm0 = vcmask 392192   ;;  %v1220_v38 = vmov 0   ;;  %s1650_s0 = inlined_call_operand.vmem [shape: bf16[48,1024], index: 0, kind: input, shape index: {}]   ;;  %s1651_s1 = inlined_call_operand.vmem [shape: bf16[32,48], index: 1, kind: input, shape index: {}]   ;;  %s1652_s2 = inlined_call_operand.vmem [shape: f32[32,1], index: 2, kind: input, shape index: {}]   ;;  %s1653_s3 = inlined_call_operand.vmem [shape: bf16[32,32], index: 3, kind: input, shape index: {}]   ;;  %s1654_s4 = inlined_call_operand.vmem [shape: f32[32,1], index: 4, kind: input, shape index: {}]   ;;  %s1655_s5 = inlined_call_operand.vmem [shape: bf16[3,32], index: 5, kind: input, shape index: {}]   ;;  %s1656_s6 = inlined_call_operand.vmem [shape: f32[3,1], index: 6, kind: input, shape index: {}]   ;;  %s1657_s7 = inlined_call_operand.hbm [shape: f32[3,1024], index: 7, kind: output, shape index: {}]  }
   0x1   :  { %v1043_v0 = vld [vmem:[%s1650_s0 + $0x80] sm:$0xf]  ;;  %v1145_v2 = vld [vmem:[%s1650_s0 + $0x84] sm:$0xf]  ;;  %v1051_v5 = vld [vmem:[%s1650_s0 + $0x88] sm:$0xf]  ;;  %1160 = vset.pattern.permute.xlu1 %v1220_v38  ;;  %1159 = vset.pattern.permute.xlu0 %v1220_v38 }
   0x2   :  { %v1149_v1 = vld [vmem:[%s1650_s0 + $0x9c] sm:$0xf0]  ;;  %v1045_v4 = vld [vmem:[%s1650_s0 + $0xa0] sm:$0xf0]  ;;  %v1150_v6 = vld [vmem:[%s1650_s0 + $0xa4] sm:$0xf0] }
   0x3   :  { %v1044_v3 = vor.u32 %v1149_v1, %v1043_v0  ;;  %v1048_v7 = vor.u32 %v1145_v2, %v1045_v4  ;;  %v1052_v8 = vor.u32 %v1150_v6, %v1051_v5  ;;  %v1146_v9 = vld [vmem:[%s1650_s0 + $0x8c] sm:$0xf]  ;;  %v1011_v11 = vld [vmem:[%s1650_s0 + $0x40] sm:$0xf]  ;;  %v1137_v14 = vld [vmem:[%s1650_s0 + $0x44] sm:$0xf] }
   0x4   :  { %v1053_v10 = vld [vmem:[%s1650_s0 + $0xa8] sm:$0xf0]  ;;  %v1141_v13 = vld [vmem:[%s1650_s0 + $0x5c] sm:$0xf0]  ;;  %v1013_v15 = vld [vmem:[%s1650_s0 + $0x60] sm:$0xf0] }
   0x5   :  { %222 = vmatpush.bf16.msra.mxu0 %v1044_v3  ;;  %v1056_v12 = vor.u32 %v1146_v9, %v1053_v10  ;;  %241 = vmatpush.bf16.msra.mxu1 %v1048_v7  ;;  %v1012_v16 = vor.u32 %v1141_v13, %v1011_v11  ;;  %v1016_v17 = vor.u32 %v1137_v14, %v1013_v15  ;;  %v1019_v18 = vld [vmem:[%s1650_s0 + $0x48] sm:$0xf]  ;;  %v1138_v20 = vld [vmem:[%s1650_s0 + $0x4c] sm:$0xf]  ;;  %v979_v23 = vld [vmem:[%s1650_s0] sm:$0xf] }
   0x6   :  { %260 = vmatpush.bf16.msra.mxu2 %v1052_v8  ;;  %v1142_v19 = vld [vmem:[%s1650_s0 + $0x64] sm:$0xf0]  ;;  %v1021_v22 = vld [vmem:[%s1650_s0 + $0x68] sm:$0xf0]  ;;  %v1133_v24 = vld [vmem:[%s1650_s0 + $0x1c] sm:$0xf0] }
   0x7   :  { %279 = vmatpush.bf16.msra.mxu3 %v1056_v12  ;;  %v1020_v21 = vor.u32 %v1142_v19, %v1019_v18  ;;  %v1024_v25 = vor.u32 %v1138_v20, %v1021_v22  ;;  %v1129_v26 = vld [vmem:[%s1650_s0 + $0x4] sm:$0xf]  ;;  %v987_v28 = vld [vmem:[%s1650_s0 + $0x8] sm:$0xf]  ;;  %v980_v29 = vor.u32 %v1133_v24, %v979_v23  ;;  %v1130_v31 = vld [vmem:[%s1650_s0 + $0xc] sm:$0xf] }
   0x8   :  { %v981_v27 = vld [vmem:[%s1650_s0 + $0x20] sm:$0xf0]  ;;  %v1134_v30 = vld [vmem:[%s1650_s0 + $0x24] sm:$0xf0]  ;;  %v989_v32 = vld [vmem:[%s1650_s0 + $0x28] sm:$0xf0] }
   0x9   :  { %223 = vmatpush.bf16.msra.mxu0 %v1012_v16  ;;  %242 = vmatpush.bf16.msra.mxu1 %v1016_v17  ;;  %v984_v33 = vor.u32 %v1129_v26, %v981_v27  ;;  %v988_v34 = vor.u32 %v1134_v30, %v987_v28  ;;  %v1337_v35 = vld [vmem:[%s1651_s1] sm:$0xff]  ;;  %v58_v36 = vld [vmem:[%s1652_s2 + $0x10] sm:$0xff]  ;;  %v992_v37 = vor.u32 %v1130_v31, %v989_v32  ;;  %v1067_v45 = vld [vmem:[%s1650_s0 + $0x98] sm:$0xf] }
   0xa   :  { %261 = vmatpush.bf16.msra.mxu2 %v1020_v21  ;;  %v56_v39 = vld [vmem:[%s1652_s2] sm:$0xff]  ;;  %v1059_v40 = vld [vmem:[%s1650_s0 + $0x90] sm:$0xf]  ;;  %v1147_v43 = vld [vmem:[%s1650_s0 + $0x94] sm:$0xf]  ;;  %72 = vperm.xlu0 %1159, %v58_v36  }
   0xb   :  { %280 = vmatpush.bf16.msra.mxu3 %v1024_v25  ;;  %v1151_v41 = vld [vmem:[%s1650_s0 + $0xac] sm:$0xf0]  ;;  %62 = vperm.xlu1 %1160, %v56_v39   ;;  %v1061_v44 = vld [vmem:[%s1650_s0 + $0xb0] sm:$0xf0]  ;;  %v1152_v47 = vld [vmem:[%s1650_s0 + $0xb4] sm:$0xf0] }
   0xc   :  { %v1060_v42 = vor.u32 %v1151_v41, %v1059_v40  ;;  %v1064_v46 = vor.u32 %v1147_v43, %v1061_v44  ;;  %v1148_v48 = vld [vmem:[%s1650_s0 + $0x9c] sm:$0xf]  ;;  %v1068_v50 = vor.u32 %v1152_v47, %v1067_v45  ;;  %v1027_v51 = vld [vmem:[%s1650_s0 + $0x50] sm:$0xf]  ;;  %v57_v53 = vld [vmem:[%s1652_s2 + $0x8] sm:$0xff] }
   0xd   :  { %224 = vmatpush.bf16.msra.mxu0 %v980_v29  ;;  %v1069_v49 = vld [vmem:[%s1650_s0 + $0xb8] sm:$0xf0]  ;;  %243 = vmatpush.bf16.msra.mxu1 %v984_v33  ;;  %v1143_v54 = vld [vmem:[%s1650_s0 + $0x6c] sm:$0xf0]  ;;  %v1139_v55 = vld [vmem:[%s1650_s0 + $0x54] sm:$0xf] }
   0xe   :  { %262 = vmatpush.bf16.msra.mxu2 %v988_v34  ;;  %v1072_v52 = vor.u32 %v1148_v48, %v1069_v49  ;;  %v1029_v56 = vld [vmem:[%s1650_s0 + $0x70] sm:$0xf0]  ;;  %v1028_v57 = vor.u32 %v1143_v54, %v1027_v51  ;;  %v1035_v59 = vld [vmem:[%s1650_s0 + $0x58] sm:$0xf]  ;;  %v1140_v61 = vld [vmem:[%s1650_s0 + $0x5c] sm:$0xf] }
   0xf   :  { %281 = vmatpush.bf16.msra.mxu3 %v992_v37  ;;  %v1032_v58 = vor.u32 %v1139_v55, %v1029_v56  ;;  %v1144_v60 = vld [vmem:[%s1650_s0 + $0x74] sm:$0xf0]  ;;  %v1037_v62 = vld [vmem:[%s1650_s0 + $0x78] sm:$0xf0]  ;;  %v995_v63 = vld [vmem:[%s1650_s0 + $0x10] sm:$0xf] }
  0x10   :  { %1073 = vmatmul.msk.bf16.vlgmr.msra.gmra.mxu0 %vm210_vm0, %v1337_v35  ;;  %1075 = vmatmul.msk.bf16.vlgmr.msra.gmra.mxu1 %vm210_vm0, %v1337_v35  ;;  %v1135_v0 = vld [vmem:[%s1650_s0 + $0x2c] sm:$0xf0]  ;;  %v59_v1 = vld [vmem:[%s1652_s2 + $0x18] sm:$0xff]  ;;  %v1036_v2 = vor.u32 %v1144_v60, %v1035_v59  ;;  %v1131_v3 = vld [vmem:[%s1650_s0 + $0x14] sm:$0xf]  ;;  %v1040_v5 = vor.u32 %v1140_v61, %v1037_v62 }
  0x11   :  { %298 = vmatpush.bf16.msrb.mxu0 %v1060_v42  ;;  %317 = vmatpush.bf16.msrb.mxu1 %v1064_v46  ;;  %v997_v4 = vld [vmem:[%s1650_s0 + $0x30] sm:$0xf0]  ;;  %v996_v6 = vor.u32 %v1135_v0, %v995_v63  ;;  %v1003_v7 = vld [vmem:[%s1650_s0 + $0x18] sm:$0xf]  ;;  %v1132_v10 = vld [vmem:[%s1650_s0 + $0x1c] sm:$0xf] }
  0x12   :  { %1077 = vmatmul.msk.bf16.vlgmr.msra.gmra.mxu2 %vm210_vm0, %v1337_v35  ;;  %1079 = vmatmul.msk.bf16.vlgmr.msra.gmra.mxu3 %vm210_vm0, %v1337_v35  ;;  %v1136_v8 = vld [vmem:[%s1650_s0 + $0x34] sm:$0xf0]  ;;  %v1000_v9 = vor.u32 %v1131_v3, %v997_v4  ;;  %v1005_v11 = vld [vmem:[%s1650_s0 + $0x38] sm:$0xf0] }
  0x13   :  { %336 = vmatpush.bf16.msrb.mxu2 %v1068_v50  ;;  %355 = vmatpush.bf16.msrb.mxu3 %v1072_v52 }
  0x14   :  { %67 = vperm.xlu1 %1160, %v57_v53  }
  0x15   :  { %299 = vmatpush.bf16.msrb.mxu0 %v1028_v57  ;;  %318 = vmatpush.bf16.msrb.mxu1 %v1032_v58 }
  0x16   :  { %12 = vsyncpa [#allocation3], 0  ;;  %77 = vperm.xlu0 %1159, %v59_v1   ;;  %1161 = vset.pattern.permute.xlu2 %v1220_v38  ;;  %v1004_v12 = vor.u32 %v1136_v8, %v1003_v7  ;;  %v1008_v13 = vor.u32 %v1132_v10, %v1005_v11  ;;  %v422_v14 = vld [vmem:[%s1654_s4 + $0x8] sm:$0xff]  ;;  %v421_v15 = vld [vmem:[%s1654_s4] sm:$0xff]  ;;  %vm455_vm1 = vcmask 261120   ;;  %vm940_vm9 = vcmask 1043456  }
  0x17   :  { %337 = vmatpush.bf16.msrb.mxu2 %v1036_v2  ;;  %356 = vmatpush.bf16.msrb.mxu3 %v1040_v5  ;;  %v1154_v16 = vld [vmem:[%s1651_s1 + $0x8] sm:$0xff]  ;;  %v1482_v4 = vld [vmem:[%s1653_s3] sm:$0xff]  ;;  %s960_s30 = sshll.u32 %s1657_s7, 4  ;;  %s961_s30 = int_to_ptr.hbm [resolvable:$true] %s960_s30 }
  0x19   :  { %300 = vmatpush.bf16.msrb.mxu0 %v996_v6  ;;  %319 = vmatpush.bf16.msrb.mxu1 %v1000_v9 }
  0x1b   :  { %338 = vmatpush.bf16.msrb.mxu2 %v1004_v12  ;;  %357 = vmatpush.bf16.msrb.mxu3 %v1008_v13 }
  0x1c   :  { %432 = vperm.xlu1 %1160, %v422_v14  }
  0x1e   :  { %427 = vperm.xlu0 %1159, %v421_v15  }
  0x20   :  { %1074 = vmatmul.msk.bf16.gmra.mxu0 %vm210_vm0, %v1154_v16  ;;  %1076 = vmatmul.msk.bf16.gmra.mxu1 %vm210_vm0, %v1154_v16 }
  0x22   :  { %1078 = vmatmul.msk.bf16.gmra.mxu2 %vm210_vm0, %v1154_v16  ;;  %1080 = vmatmul.msk.bf16.gmra.mxu3 %vm210_vm0, %v1154_v16 }
  0x30   :  { %1081 = vmatmul.msk.bf16.vlgmr.msrb.gmra.mxu0 %vm210_vm0, %v1337_v35  ;;  %1083 = vmatmul.msk.bf16.vlgmr.msrb.gmra.mxu1 %vm210_vm0, %v1337_v35 }
  0x32   :  { %1085 = vmatmul.msk.bf16.vlgmr.msrb.gmra.mxu2 %vm210_vm0, %v1337_v35  ;;  %1087 = vmatmul.msk.bf16.vlgmr.msrb.gmra.mxu3 %vm210_vm0, %v1337_v35 }
  0x40   :  { %1082 = vmatmul.msk.bf16.gmra.mxu0 %vm210_vm0, %v1154_v16  ;;  %1084 = vmatmul.msk.bf16.gmra.mxu1 %vm210_vm0, %v1154_v16 }
  0x42   :  { %1086 = vmatmul.msk.bf16.gmra.mxu2 %vm210_vm0, %v1154_v16  ;;  %1088 = vmatmul.msk.bf16.gmra.mxu3 %vm210_vm0, %v1154_v16 }
  0x7c   :  { %v1458_v24 = vpop.permute.xlu0 %72 }
  0x7d   :  { %v1456_v23 = vpop.permute.xlu1 %62 }
  0x86   :  { %v1460_v29 = vpop.permute.xlu1 %67 }
  0x88   :  { %v1462_v30 = vpop.permute.xlu0 %77 }
  0x8d   :  { %v226_v17 = vpop.f32.mrf.mxu0  ;;  %v245_v18 = vpop.f32.mrf.mxu1 }
  0x8e   :  { %v227_v38 = vadd.f32 %v226_v17, %v1456_v23  ;;  %v246_v41 = vadd.f32 %v245_v18, %v1456_v23 }
  0x90   :  { %v369_v48 = vmax.f32 %v227_v38, 0.0  ;;  %v370_v52 = vmax.f32 %v246_v41, 0.0 }
  0x95   :  { %v264_v19 = vpop.f32.mrf.mxu2  ;;  %v283_v20 = vpop.f32.mrf.mxu3 }
  0x96   :  { %v228_v21 = vpop.f32.mrf.mxu0  ;;  %v247_v22 = vpop.f32.mrf.mxu1  ;;  %v265_v0 = vadd.f32 %v264_v19, %v1456_v23  ;;  %v284_v5 = vadd.f32 %v283_v20, %v1456_v23 }
  0x97   :  { %v229_v39 = vadd.f32 %v228_v21, %v1460_v29  ;;  %v248_v42 = vadd.f32 %v247_v22, %v1460_v29 }
  0x98   :  { %v371_v12 = vmax.f32 %v265_v0, 0.0  ;;  %v372_v13 = vmax.f32 %v284_v5, 0.0 }
  0x99   :  { %v377_v49 = vmax.f32 %v229_v39, 0.0  ;;  %v378_v53 = vmax.f32 %v248_v42, 0.0 }
  0x9b   :  { %v405_v63 = vpack.c.bf16 %v377_v49, %v369_v48  ;;  %v406_v3 = vpack.c.bf16 %v378_v53, %v370_v52 }
  0x9d   :  { %v266_v25 = vpop.f32.mrf.mxu2  ;;  %v285_v26 = vpop.f32.mrf.mxu3 }
  0x9e   :  { %v231_v27 = vpop.f32.mrf.mxu0  ;;  %v250_v28 = vpop.f32.mrf.mxu1  ;;  %v267_v56 = vadd.f32 %v266_v25, %v1460_v29  ;;  %v286_v60 = vadd.f32 %v285_v26, %v1460_v29  ;;  %v1496_v26 = vld [vmem:[%s1653_s3 + $0x8] sm:$0xff] }
  0x9f   :  { %v232_v31 = vadd.f32 %v231_v27, %v1458_v24  ;;  %v251_v33 = vadd.f32 %v250_v28, %v1458_v24 }
  0xa0   :  { %v379_v8 = vmax.f32 %v267_v56, 0.0  ;;  %v380_v10 = vmax.f32 %v286_v60, 0.0 }
  0xa1   :  { %v385_v43 = vmax.f32 %v232_v31, 0.0  ;;  %v386_v45 = vmax.f32 %v251_v33, 0.0  ;;  %v423_v31 = vld [vmem:[%s1654_s4 + $0x10] sm:$0xff] }
  0xa2   :  { %v407_v15 = vpack.c.bf16 %v379_v8, %v371_v12  ;;  %v408_v18 = vpack.c.bf16 %v380_v10, %v372_v13  ;;  %437 = vperm.xlu2 %1161, %v423_v31  }
  0xa5   :  { %v269_v32 = vpop.f32.mrf.mxu2  ;;  %v288_v34 = vpop.f32.mrf.mxu3 }
  0xa6   :  { %v233_v35 = vpop.f32.mrf.mxu0  ;;  %v252_v37 = vpop.f32.mrf.mxu1  ;;  %v270_v50 = vadd.f32 %v269_v32, %v1458_v24  ;;  %v289_v54 = vadd.f32 %v288_v34, %v1458_v24 }
  0xa7   :  { %v234_v36 = vadd.f32 %v233_v35, %v1462_v30  ;;  %v253_v40 = vadd.f32 %v252_v37, %v1462_v30 }
  0xa8   :  { %v387_v1 = vmax.f32 %v270_v50, 0.0  ;;  %v388_v6 = vmax.f32 %v289_v54, 0.0 }
  0xa9   :  { %v393_v44 = vmax.f32 %v234_v36, 0.0  ;;  %v394_v46 = vmax.f32 %v253_v40, 0.0 }
  0xab   :  { %v413_v47 = vpack.c.bf16 %v393_v44, %v385_v43  ;;  %v414_v51 = vpack.c.bf16 %v394_v46, %v386_v45 }
  0xad   :  { %v271_v55 = vpop.f32.mrf.mxu2  ;;  %468 = vmatpush.bf16.msra.mxu0 %v413_v47  ;;  %v290_v58 = vpop.f32.mrf.mxu3  ;;  %487 = vmatpush.bf16.msra.mxu1 %v414_v51  ;;  %v424_v51 = vld [vmem:[%s1654_s4 + $0x18] sm:$0xff] }
  0xae   :  { %v272_v57 = vadd.f32 %v271_v55, %v1462_v30  ;;  %v302_v59 = vpop.f32.mrf.mxu0  ;;  %v291_v61 = vadd.f32 %v290_v58, %v1462_v30  ;;  %v321_v62 = vpop.f32.mrf.mxu1  ;;  %442 = vperm.xlu2 %1161, %v424_v51  }
  0xaf   :  { %v303_v40 = vadd.f32 %v302_v59, %v1456_v23  ;;  %v322_v43 = vadd.f32 %v321_v62, %v1456_v23 }
  0xb0   :  { %v395_v2 = vmax.f32 %v272_v57, 0.0  ;;  %v396_v7 = vmax.f32 %v291_v61, 0.0 }
  0xb1   :  { %469 = vmatpush.bf16.msra.mxu0 %v405_v63  ;;  %488 = vmatpush.bf16.msra.mxu1 %v406_v3  ;;  %v373_v52 = vmax.f32 %v303_v40, 0.0  ;;  %v374_v55 = vmax.f32 %v322_v43, 0.0 }
  0xb2   :  { %v415_v9 = vpack.c.bf16 %v395_v2, %v387_v1  ;;  %v416_v11 = vpack.c.bf16 %v396_v7, %v388_v6 }
  0xb4   :  { %506 = vmatpush.bf16.msra.mxu2 %v415_v9  ;;  %1097 = vmatmul.msk.bf16.vlgmr.msra.gmra.mxu0 %vm455_vm1, %v1482_v4 }
  0xb5   :  { %525 = vmatpush.bf16.msra.mxu3 %v416_v11  ;;  %v340_v14 = vpop.f32.mrf.mxu2  ;;  %1099 = vmatmul.msk.bf16.vlgmr.msra.gmra.mxu1 %vm455_vm1, %v1482_v4  ;;  %v359_v16 = vpop.f32.mrf.mxu3 }
  0xb6   :  { %v304_v17 = vpop.f32.mrf.mxu0  ;;  %v323_v19 = vpop.f32.mrf.mxu1  ;;  %v341_v62 = vadd.f32 %v340_v14, %v1456_v23  ;;  %v360_v1 = vadd.f32 %v359_v16, %v1456_v23 }
  0xb7   :  { %v305_v35 = vadd.f32 %v304_v17, %v1460_v29  ;;  %v324_v38 = vadd.f32 %v323_v19, %v1460_v29 }
  0xb8   :  { %507 = vmatpush.bf16.msra.mxu2 %v407_v15  ;;  %v376_v9 = vmax.f32 %v360_v1, 0.0 }
  0xb9   :  { %526 = vmatpush.bf16.msra.mxu3 %v408_v18  ;;  %v381_v46 = vmax.f32 %v305_v35, 0.0  ;;  %v382_v48 = vmax.f32 %v324_v38, 0.0 }
  0xbb   :  { %1101 = vmatmul.msk.bf16.vlgmr.msra.gmra.mxu2 %vm455_vm1, %v1482_v4  ;;  %v409_v59 = vpack.c.bf16 %v381_v46, %v373_v52  ;;  %v410_v63 = vpack.c.bf16 %v382_v48, %v374_v55 }
  0xbc   :  { %1103 = vmatmul.msk.bf16.vlgmr.msra.gmra.mxu3 %vm455_vm1, %v1482_v4 }
  0xbd   :  { %v342_v20 = vpop.f32.mrf.mxu2  ;;  %v361_v21 = vpop.f32.mrf.mxu3 }
  0xbe   :  { %v307_v22 = vpop.f32.mrf.mxu0  ;;  %v326_v25 = vpop.f32.mrf.mxu1  ;;  %v343_v56 = vadd.f32 %v342_v20, %v1460_v29  ;;  %v362_v60 = vadd.f32 %v361_v21, %v1460_v29  ;;  %v663_v29 = vld [vmem:[%s1656_s6] sm:$0x7] }
  0xbf   :  { %v308_v27 = vadd.f32 %v307_v22, %v1458_v24  ;;  %v327_v32 = vadd.f32 %v326_v25, %v1458_v24  ;;  %666 = vperm.xlu2 %1161, %v663_v29  }
  0xc0   :  { %v383_v5 = vmax.f32 %v343_v56, 0.0  ;;  %v384_v7 = vmax.f32 %v362_v60, 0.0 }
  0xc1   :  { %v389_v41 = vmax.f32 %v308_v27, 0.0  ;;  %v390_v44 = vmax.f32 %v327_v32, 0.0  ;;  %v1553_v27 = vpop.permute.xlu1 %432 }
  0xc2   :  { %v412_v10 = vpack.c.bf16 %v384_v7, %v376_v9 }
  0xc4   :  { %1098 = vmatmul.msk.bf16.gmra.mxu0 %vm455_vm1, %v1496_v26 }
  0xc5   :  { %v345_v28 = vpop.f32.mrf.mxu2  ;;  %1100 = vmatmul.msk.bf16.gmra.mxu1 %vm455_vm1, %v1496_v26  ;;  %v364_v33 = vpop.f32.mrf.mxu3 }
  0xc6   :  { %v309_v34 = vpop.f32.mrf.mxu0  ;;  %v328_v37 = vpop.f32.mrf.mxu1  ;;  %v346_v49 = vadd.f32 %v345_v28, %v1458_v24  ;;  %v365_v53 = vadd.f32 %v364_v33, %v1458_v24 }
  0xc7   :  { %v310_v36 = vadd.f32 %v309_v34, %v1462_v30  ;;  %v329_v39 = vadd.f32 %v328_v37, %v1462_v30  ;;  %v1557_v34 = vpop.permute.xlu0 %427 }
  0xc8   :  { %v391_v0 = vmax.f32 %v346_v49, 0.0  ;;  %v392_v2 = vmax.f32 %v365_v53, 0.0 }
  0xc9   :  { %v397_v42 = vmax.f32 %v310_v36, 0.0  ;;  %v398_v45 = vmax.f32 %v329_v39, 0.0 }
  0xcb   :  { %v417_v47 = vpack.c.bf16 %v397_v42, %v389_v41  ;;  %1102 = vmatmul.msk.bf16.gmra.mxu2 %vm455_vm1, %v1496_v26  ;;  %v418_v50 = vpack.c.bf16 %v398_v45, %v390_v44 }
  0xcc   :  { %1104 = vmatmul.msk.bf16.gmra.mxu3 %vm455_vm1, %v1496_v26 }
  0xcd   :  { %v347_v54 = vpop.f32.mrf.mxu2  ;;  %544 = vmatpush.bf16.msrb.mxu0 %v417_v47  ;;  %v366_v58 = vpop.f32.mrf.mxu3  ;;  %563 = vmatpush.bf16.msrb.mxu1 %v418_v50 }
  0xce   :  { %v348_v57 = vadd.f32 %v347_v54, %v1462_v30  ;;  %v367_v61 = vadd.f32 %v366_v58, %v1462_v30  ;;  %v375_v30 = vmax.f32 %v341_v62, 0.0  ;;  %v1566_v54 = vld [vmem:[%s1655_s5] sm:$0x3]  ;;  %s1221_s5 = smov [#allocation2]  }
  0xcf   :  { %s958_s27 = sshll.u32 %s1221_s5, 4  ;;  %s959_s27 = int_to_ptr.vmem [resolvable:$true] %s958_s27 }
  0xd0   :  { %v399_v24 = vmax.f32 %v348_v57, 0.0  ;;  %v400_v3 = vmax.f32 %v367_v61, 0.0  ;;  %v411_v23 = vpack.c.bf16 %v383_v5, %v375_v30 }
  0xd1   :  { %545 = vmatpush.bf16.msrb.mxu0 %v409_v59  ;;  %564 = vmatpush.bf16.msrb.mxu1 %v410_v63 }
  0xd2   :  { %v419_v6 = vpack.c.bf16 %v399_v24, %v391_v0  ;;  %v420_v8 = vpack.c.bf16 %v400_v3, %v392_v2 }
  0xd4   :  { %582 = vmatpush.bf16.msrb.mxu2 %v419_v6  ;;  %1105 = vmatmul.msk.bf16.vlgmr.msrb.gmra.mxu0 %vm455_vm1, %v1482_v4 }
  0xd5   :  { %601 = vmatpush.bf16.msrb.mxu3 %v420_v8  ;;  %1107 = vmatmul.msk.bf16.vlgmr.msrb.gmra.mxu1 %vm455_vm1, %v1482_v4 }
  0xd8   :  { %583 = vmatpush.bf16.msrb.mxu2 %v411_v23 }
  0xd9   :  { %602 = vmatpush.bf16.msrb.mxu3 %v412_v10 }
  0xdb   :  { %1109 = vmatmul.msk.bf16.vlgmr.msrb.gmra.mxu2 %vm455_vm1, %v1482_v4 }
  0xdc   :  { %1111 = vmatmul.msk.bf16.vlgmr.msrb.gmra.mxu3 %vm455_vm1, %v1482_v4 }
  0xe4   :  { %1106 = vmatmul.msk.bf16.gmra.mxu0 %vm455_vm1, %v1496_v26 }
  0xe5   :  { %1108 = vmatmul.msk.bf16.gmra.mxu1 %vm455_vm1, %v1496_v26 }
  0xeb   :  { %1110 = vmatmul.msk.bf16.gmra.mxu2 %vm455_vm1, %v1496_v26 }
  0xec   :  { %1112 = vmatmul.msk.bf16.gmra.mxu3 %vm455_vm1, %v1496_v26 }
  0xfc   :  { %v1547_v15 = vpop.permute.xlu2 %437 }
 0x108   :  { %v1551_v25 = vpop.permute.xlu2 %442 }
 0x131   :  { %v471_v11 = vpop.f32.mrf.mxu0 }
 0x132   :  { %v490_v12 = vpop.f32.mrf.mxu1  ;;  %v472_v38 = vadd.f32 %v471_v11, %v1557_v34 }
 0x133   :  { %v491_v40 = vadd.f32 %v490_v12, %v1557_v34 }
 0x134   :  { %v614_v48 = vmax.f32 %v472_v38, 0.0 }
 0x135   :  { %v615_v49 = vmax.f32 %v491_v40, 0.0 }
 0x139   :  { %v473_v13 = vpop.f32.mrf.mxu0 }
 0x13a   :  { %v492_v14 = vpop.f32.mrf.mxu1  ;;  %v474_v28 = vadd.f32 %v473_v13, %v1553_v27 }
 0x13b   :  { %v493_v35 = vadd.f32 %v492_v14, %v1553_v27 }
 0x13c   :  { %v622_v42 = vmax.f32 %v474_v28, 0.0 }
 0x13d   :  { %v623_v45 = vmax.f32 %v493_v35, 0.0 }
 0x13e   :  { %v509_v16 = vpop.f32.mrf.mxu2  ;;  %v647_v51 = vpack.c.bf16 %v622_v42, %v614_v48 }
 0x13f   :  { %v528_v4 = vpop.f32.mrf.mxu3  ;;  %v648_v53 = vpack.c.bf16 %v623_v45, %v615_v49  ;;  %v510_v63 = vadd.f32 %v509_v16, %v1557_v34 }
 0x140   :  { %v529_v2 = vadd.f32 %v528_v4, %v1557_v34 }
 0x141   :  { %v476_v17 = vpop.f32.mrf.mxu0  ;;  %v616_v9 = vmax.f32 %v510_v63, 0.0 }
 0x142   :  { %v495_v18 = vpop.f32.mrf.mxu1  ;;  %v477_v19 = vadd.f32 %v476_v17, %v1547_v15  ;;  %v617_v23 = vmax.f32 %v529_v2, 0.0 }
 0x143   :  { %v496_v21 = vadd.f32 %v495_v18, %v1547_v15 }
 0x144   :  { %v630_v31 = vmax.f32 %v477_v19, 0.0 }
 0x145   :  { %v631_v36 = vmax.f32 %v496_v21, 0.0 }
 0x146   :  { %v511_v20 = vpop.f32.mrf.mxu2 }
 0x147   :  { %v530_v22 = vpop.f32.mrf.mxu3  ;;  %v512_v58 = vadd.f32 %v511_v20, %v1553_v27 }
 0x148   :  { %v531_v61 = vadd.f32 %v530_v22, %v1553_v27 }
 0x149   :  { %v478_v26 = vpop.f32.mrf.mxu0  ;;  %v624_v7 = vmax.f32 %v512_v58, 0.0 }
 0x14a   :  { %v479_v32 = vadd.f32 %v478_v26, %v1551_v25  ;;  %v497_v33 = vpop.f32.mrf.mxu1  ;;  %v625_v29 = vmax.f32 %v531_v61, 0.0 }
 0x14b   :  { %v498_v37 = vadd.f32 %v497_v33, %v1551_v25  ;;  %v649_v11 = vpack.c.bf16 %v624_v7, %v616_v9 }
 0x14c   :  { %v638_v39 = vmax.f32 %v479_v32, 0.0  ;;  %v650_v13 = vpack.c.bf16 %v625_v29, %v617_v23 }
 0x14d   :  { %v639_v41 = vmax.f32 %v498_v37, 0.0 }
 0x14e   :  { %v655_v43 = vpack.c.bf16 %v638_v39, %v630_v31  ;;  %v514_v44 = vpop.f32.mrf.mxu2 }
 0x14f   :  { %v656_v46 = vpack.c.bf16 %v639_v41, %v631_v36  ;;  %v533_v47 = vpop.f32.mrf.mxu3  ;;  %v515_v55 = vadd.f32 %v514_v44, %v1547_v15 }
 0x150   :  { %678 = vmatpush.bf16.msra.mxu0 %v655_v43  ;;  %v534_v56 = vadd.f32 %v533_v47, %v1547_v15 }
 0x151   :  { %691 = vmatpush.bf16.msra.mxu1 %v656_v46  ;;  %v547_v50 = vpop.f32.mrf.mxu0  ;;  %v632_v0 = vmax.f32 %v515_v55, 0.0 }
 0x152   :  { %v566_v52 = vpop.f32.mrf.mxu1  ;;  %v633_v3 = vmax.f32 %v534_v56, 0.0  ;;  %v548_v32 = vadd.f32 %v547_v50, %v1557_v34 }
 0x153   :  { %v567_v36 = vadd.f32 %v566_v52, %v1557_v34 }
 0x154   :  { %679 = vmatpush.bf16.msra.mxu0 %v647_v51  ;;  %v618_v45 = vmax.f32 %v548_v32, 0.0 }
 0x155   :  { %692 = vmatpush.bf16.msra.mxu1 %v648_v53  ;;  %v619_v46 = vmax.f32 %v567_v36, 0.0 }
 0x156   :  { %v516_v57 = vpop.f32.mrf.mxu2 }
 0x157   :  { %v517_v59 = vadd.f32 %v516_v57, %v1551_v25  ;;  %v535_v60 = vpop.f32.mrf.mxu3  ;;  %1113 = vmatmul.msk.bf16.vlgmr.msra.gmra.mxu0 %vm455_vm1, %v1566_v54 }
 0x158   :  { %v536_v62 = vadd.f32 %v535_v60, %v1551_v25  ;;  %1114 = vmatmul.msk.bf16.vlgmr.msra.gmra.mxu1 %vm455_vm1, %v1566_v54 }
 0x159   :  { %v640_v24 = vmax.f32 %v517_v59, 0.0  ;;  %v549_v1 = vpop.f32.mrf.mxu0 }
 0x15a   :  { %v641_v5 = vmax.f32 %v536_v62, 0.0  ;;  %v568_v6 = vpop.f32.mrf.mxu1  ;;  %v550_v21 = vadd.f32 %v549_v1, %v1553_v27 }
 0x15b   :  { %v657_v8 = vpack.c.bf16 %v640_v24, %v632_v0  ;;  %v569_v28 = vadd.f32 %v568_v6, %v1553_v27 }
 0x15c   :  { %v658_v30 = vpack.c.bf16 %v641_v5, %v633_v3  ;;  %v626_v39 = vmax.f32 %v550_v21, 0.0 }
 0x15d   :  { %704 = vmatpush.bf16.msra.mxu2 %v657_v8  ;;  %v627_v42 = vmax.f32 %v569_v28, 0.0 }
 0x15e   :  { %717 = vmatpush.bf16.msra.mxu3 %v658_v30  ;;  %v585_v10 = vpop.f32.mrf.mxu2  ;;  %v651_v47 = vpack.c.bf16 %v626_v39, %v618_v45 }
 0x15f   :  { %v604_v12 = vpop.f32.mrf.mxu3  ;;  %v652_v48 = vpack.c.bf16 %v627_v42, %v619_v46  ;;  %v586_v58 = vadd.f32 %v585_v10, %v1557_v34 }
 0x160   :  { %v605_v60 = vadd.f32 %v604_v12, %v1557_v34  ;;  %v1608_v34 = vpop.permute.xlu2 %666 }
 0x161   :  { %705 = vmatpush.bf16.msra.mxu2 %v649_v11  ;;  %v552_v14 = vpop.f32.mrf.mxu0  ;;  %v620_v2 = vmax.f32 %v586_v58, 0.0 }
 0x162   :  { %718 = vmatpush.bf16.msra.mxu3 %v650_v13  ;;  %v571_v16 = vpop.f32.mrf.mxu1  ;;  %v553_v18 = vadd.f32 %v552_v14, %v1547_v15 }
 0x163   :  { %v572_v19 = vadd.f32 %v571_v16, %v1547_v15 }
 0x164   :  { %1115 = vmatmul.msk.bf16.vlgmr.msra.gmra.mxu2 %vm455_vm1, %v1566_v54  ;;  %v634_v33 = vmax.f32 %v553_v18, 0.0 }
 0x165   :  { %1116 = vmatmul.msk.bf16.vlgmr.msra.gmra.mxu3 %vm455_vm1, %v1566_v54  ;;  %v635_v37 = vmax.f32 %v572_v19, 0.0 }
 0x166   :  { %v587_v4 = vpop.f32.mrf.mxu2 }
 0x167   :  { %v606_v17 = vpop.f32.mrf.mxu3  ;;  %v588_v52 = vadd.f32 %v587_v4, %v1553_v27 }
 0x168   :  { %v607_v56 = vadd.f32 %v606_v17, %v1553_v27  ;;  %v621_v27 = vmax.f32 %v605_v60, 0.0 }
 0x169   :  { %v554_v20 = vpop.f32.mrf.mxu0  ;;  %v628_v63 = vmax.f32 %v588_v52, 0.0 }
 0x16a   :  { %v555_v22 = vadd.f32 %v554_v20, %v1551_v25  ;;  %v573_v26 = vpop.f32.mrf.mxu1  ;;  %v629_v24 = vmax.f32 %v607_v56, 0.0 }
 0x16b   :  { %v574_v31 = vadd.f32 %v573_v26, %v1551_v25 }
 0x16c   :  { %v642_v35 = vmax.f32 %v555_v22, 0.0  ;;  %v654_v3 = vpack.c.bf16 %v629_v24, %v621_v27 }
 0x16d   :  { %v643_v38 = vmax.f32 %v574_v31, 0.0 }
 0x16e   :  { %v659_v40 = vpack.c.bf16 %v642_v35, %v634_v33  ;;  %v590_v41 = vpop.f32.mrf.mxu2 }
 0x16f   :  { %v660_v43 = vpack.c.bf16 %v643_v38, %v635_v37  ;;  %v609_v44 = vpop.f32.mrf.mxu3  ;;  %v591_v49 = vadd.f32 %v590_v41, %v1547_v15 }
 0x170   :  { %730 = vmatpush.bf16.msrb.mxu0 %v659_v40  ;;  %v610_v50 = vadd.f32 %v609_v44, %v1547_v15 }
 0x171   :  { %743 = vmatpush.bf16.msrb.mxu1 %v660_v43  ;;  %v636_v59 = vmax.f32 %v591_v49, 0.0 }
 0x172   :  { %v637_v61 = vmax.f32 %v610_v50, 0.0 }
 0x174   :  { %731 = vmatpush.bf16.msrb.mxu0 %v651_v47 }
 0x175   :  { %744 = vmatpush.bf16.msrb.mxu1 %v652_v48 }
 0x176   :  { %v592_v51 = vpop.f32.mrf.mxu2 }
 0x177   :  { %v593_v53 = vadd.f32 %v592_v51, %v1551_v25  ;;  %v611_v55 = vpop.f32.mrf.mxu3  ;;  %1117 = vmatmul.msk.bf16.vlgmr.msrb.gmra.mxu0 %vm455_vm1, %v1566_v54 }
 0x178   :  { %v612_v57 = vadd.f32 %v611_v55, %v1551_v25  ;;  %1118 = vmatmul.msk.bf16.vlgmr.msrb.gmra.mxu1 %vm455_vm1, %v1566_v54  ;;  %v653_v25 = vpack.c.bf16 %v628_v63, %v620_v2 }
 0x179   :  { %v644_v15 = vmax.f32 %v593_v53, 0.0 }
 0x17a   :  { %v645_v62 = vmax.f32 %v612_v57, 0.0 }
 0x17b   :  { %v661_v0 = vpack.c.bf16 %v644_v15, %v636_v59 }
 0x17c   :  { %v662_v1 = vpack.c.bf16 %v645_v62, %v637_v61 }
 0x17d   :  { %756 = vmatpush.bf16.msrb.mxu2 %v661_v0 }
 0x17e   :  { %769 = vmatpush.bf16.msrb.mxu3 %v662_v1 }
 0x181   :  { %757 = vmatpush.bf16.msrb.mxu2 %v653_v25 }
 0x182   :  { %770 = vmatpush.bf16.msrb.mxu3 %v654_v3 }
 0x184   :  { %1119 = vmatmul.msk.bf16.vlgmr.msrb.gmra.mxu2 %vm455_vm1, %v1566_v54 }
 0x185   :  { %1120 = vmatmul.msk.bf16.vlgmr.msrb.gmra.mxu3 %vm455_vm1, %v1566_v54 }
 0x1d4   :  { %v681_v5 = vpop.f32.mrf.mxu0 }
 0x1d5   :  { %v682_v6 = vadd.f32 %v681_v5, %v1608_v34  ;;  %v694_v7 = vpop.f32.mrf.mxu1 }
 0x1d6   :  { %v695_v8 = vadd.f32 %v694_v7, %v1608_v34 }
 0x1d7   :  { %v1121_v29 = vmul.f32 -1.442695, %v682_v6 }
 0x1d8   :  { %v1122_v30 = vmul.f32 -1.442695, %v695_v8 }
 0x1d9   :  { %1162 = vpow2.f32 %v1121_v29 }
 0x1da   :  { %1164 = vpow2.f32 %v1122_v30 }
 0x1dc   :  { %v683_v9 = vpop.f32.mrf.mxu0 }
 0x1dd   :  { %v696_v23 = vpop.f32.mrf.mxu1 }
 0x1df   :  { %v1163_v10 = vpop.eup %1162 }
 0x1e0   :  { %v1165_v11 = vpop.eup %1164  ;;  %v800_v12 = vadd.f32 1.0, %v1163_v10 }
 0x1e1   :  { %v801_v13 = vadd.f32 1.0, %v1165_v11 }
 0x1e2   :  { %1166 = vrcp.f32 %v800_v12  ;;  %v819_v40 = vand.u32 2147483648, %v800_v12  ;;  %vm813_vm6 = vweird.f32 %v800_v12  ;;  %v817_v43 = vand.u32 2147483647, %v800_v12 }
 0x1e3   :  { %1168 = vrcp.f32 %v801_v13  ;;  %v834_v32 = vand.u32 2147483648, %v801_v13  ;;  %v832_v35 = vand.u32 2147483647, %v801_v13  ;;  %vm828_vm4 = vweird.f32 %v801_v13 }
 0x1e4   :  { %v820_v53 = vor.u32 1.1754944e-38, %v819_v40  ;;  %vm818_vm10 = vcmp.eq.f32.partialorder %v817_v43, 8.507059e+37 }
 0x1e5   :  { %v835_v41 = vor.u32 1.1754944e-38, %v834_v32  ;;  %vm833_vm7 = vcmp.eq.f32.partialorder %v832_v35, 8.507059e+37 }
 0x1e7   :  { %v707_v54 = vpop.f32.mrf.mxu2 }
 0x1e8   :  { %v1167_v14 = vpop.eup %1166  ;;  %v708_v16 = vadd.f32 %v707_v54, %v1608_v34  ;;  %v720_v4 = vpop.f32.mrf.mxu3 }
 0x1e9   :  { %v1169_v17 = vpop.eup %1168  ;;  %v809_v18 = vmul.f32 %v1167_v14, %v800_v12  ;;  %v721_v19 = vadd.f32 %v720_v4, %v1608_v34  ;;  %vm814_vm3 = vweird.f32 %v1167_v14 }
 0x1ea   :  { %v824_v20 = vmul.f32 %v1169_v17, %v801_v13  ;;  %v1123_v21 = vmul.f32 -1.442695, %v708_v16  ;;  %vm829_vm2 = vweird.f32 %v1169_v17  ;;  %vm1614_vm8 = vmor %vm813_vm6, %vm814_vm3 }
 0x1eb   :  { %v810_v22 = vsub.f32 1.0, %v809_v18  ;;  %v1124_v26 = vmul.f32 -1.442695, %v721_v19  ;;  %vm830_vm5 = vmor %vm828_vm4, %vm829_vm2 }
 0x1ec   :  { %v825_v28 = vsub.f32 1.0, %v824_v20  ;;  %1170 = vpow2.f32 %v1123_v21 }
 0x1ed   :  { %v811_v31 = vmul.f32 %v1167_v14, %v810_v22  ;;  %1172 = vpow2.f32 %v1124_v26 }
 0x1ee   :  { %v826_v33 = vmul.f32 %v1169_v17, %v825_v28 }
 0x1ef   :  { %v709_v36 = vpop.f32.mrf.mxu2  ;;  %v812_v37 = vadd.f32 %v1167_v14, %v811_v31 }
 0x1f0   :  { %v827_v38 = vadd.f32 %v1169_v17, %v826_v33  ;;  %v722_v39 = vpop.f32.mrf.mxu3 }
 0x1f1   :  { %v816_v51 = vsel %vm1614_vm8, %v1167_v14, %v812_v37 }
 0x1f2   :  { %v1171_v42 = vpop.eup %1170  ;;  %v831_v44 = vsel %vm830_vm5, %v1169_v17, %v827_v38  ;;  %v821_v58 = vsel %vm818_vm10, %v820_v53, %v816_v51 }
 0x1f3   :  { %v1173_v45 = vpop.eup %1172  ;;  %v802_v47 = vadd.f32 1.0, %v1171_v42  ;;  %v836_v48 = vsel %vm833_vm7, %v835_v41, %v831_v44 }
 0x1f4   :  { %v803_v49 = vadd.f32 1.0, %v1173_v45  ;;  %v733_v50 = vpop.f32.mrf.mxu0  ;;  %v936_v52 = vrot.slane %v836_v48, 4 }
 0x1f5   :  { %1174 = vrcp.f32 %v802_v47  ;;  %v746_v55 = vpop.f32.mrf.mxu1  ;;  %v734_v56 = vadd.f32 %v733_v50, %v1608_v34  ;;  %vm843_vm13 = vweird.f32 %v802_v47  ;;  %v849_v9 = vand.u32 2147483648, %v802_v47 }
 0x1f6   :  { %1176 = vrcp.f32 %v803_v49  ;;  %v747_v57 = vadd.f32 %v746_v55, %v1608_v34  ;;  %v941_v59 = vsel %vm940_vm9, %v821_v58, %v936_v52  ;;  %v864_v6 = vand.u32 2147483648, %v803_v49 }
 0x1f7   :  { %v1125_v15 = vmul.f32 -1.442695, %v734_v56  ;;  %949 = vst [vmem:[#allocation2] sm:$0x77] %v941_v59  ;;  %v862_v29 = vand.u32 2147483647, %v803_v49  ;;  %vm858_vm15 = vweird.f32 %v803_v49 }
 0x1f8   :  { %v1126_v60 = vmul.f32 -1.442695, %v747_v57  ;;  %v847_v12 = vand.u32 2147483647, %v802_v47  ;;  %v865_v13 = vor.u32 1.1754944e-38, %v864_v6  ;;  %v850_v16 = vor.u32 1.1754944e-38, %v849_v9 }
 0x1f9   :  { %1178 = vpow2.f32 %v1125_v15  ;;  %vm863_vm1 = vcmp.eq.f32.partialorder %v862_v29, 8.507059e+37 }
 0x1fa   :  { %1180 = vpow2.f32 %v1126_v60  ;;  %vm848_vm2 = vcmp.eq.f32.partialorder %v847_v12, 8.507059e+37 }
 0x1fb   :  { %v1175_v61 = vpop.eup %1174 }
 0x1fc   :  { %v1177_v62 = vpop.eup %1176  ;;  %v839_v63 = vmul.f32 %v1175_v61, %v802_v47  ;;  %v735_v0 = vpop.f32.mrf.mxu0  ;;  %vm844_vm11 = vweird.f32 %v1175_v61 }
 0x1fd   :  { %v854_v24 = vmul.f32 %v1177_v62, %v803_v49  ;;  %v748_v1 = vpop.f32.mrf.mxu1  ;;  %vm859_vm12 = vweird.f32 %v1177_v62  ;;  %vm1625_vm14 = vmor %vm843_vm13, %vm844_vm11 }
 0x1fe   :  { %v840_v2 = vsub.f32 1.0, %v839_v63  ;;  %vm860_vm0 = vmor %vm858_vm15, %vm859_vm12 }
 0x1ff   :  { %v855_v27 = vsub.f32 1.0, %v854_v24  ;;  %v1179_v3 = vpop.eup %1178 }
 0x200   :  { %v841_v25 = vmul.f32 %v1175_v61, %v840_v2  ;;  %v1181_v7 = vpop.eup %1180  ;;  %v1623_v30 = vadd.f32 1.0, %v1179_v3 }
 0x201   :  { %v856_v5 = vmul.f32 %v1177_v62, %v855_v27  ;;  %v805_v10 = vadd.f32 1.0, %v1181_v7 }
 0x202   :  { %v842_v8 = vadd.f32 %v1175_v61, %v841_v25  ;;  %1182 = vrcp.f32 %v1623_v30  ;;  %v879_v48 = vand.u32 2147483648, %v1623_v30  ;;  %vm873_vm7 = vweird.f32 %v1623_v30 }
 0x203   :  { %v857_v23 = vadd.f32 %v1177_v62, %v856_v5  ;;  %1184 = vrcp.f32 %v805_v10  ;;  %vm888_vm4 = vweird.f32 %v805_v10  ;;  %v894_v42 = vand.u32 2147483648, %v805_v10 }
 0x204   :  { %v846_v54 = vsel %vm1625_vm14, %v1175_v61, %v842_v8  ;;  %v892_v46 = vand.u32 2147483647, %v805_v10  ;;  %v877_v50 = vand.u32 2147483647, %v1623_v30  ;;  %v880_v56 = vor.u32 1.1754944e-38, %v879_v48 }
 0x205   :  { %v861_v14 = vsel %vm860_vm0, %v1177_v62, %v857_v23  ;;  %v851_v22 = vsel %vm848_vm2, %v850_v16, %v846_v54  ;;  %v895_v53 = vor.u32 1.1754944e-38, %v894_v42 }
 0x206   :  { %v866_v17 = vsel %vm863_vm1, %v865_v13, %v861_v14  ;;  %vm893_vm10 = vcmp.eq.f32.partialorder %v892_v46, 8.507059e+37  ;;  %vm878_vm11 = vcmp.eq.f32.partialorder %v877_v50, 8.507059e+37 }
 0x207   :  { %v759_v4 = vpop.f32.mrf.mxu2  ;;  %v937_v20 = vrot.slane %v866_v17, 4 }
 0x208   :  { %v760_v18 = vadd.f32 %v759_v4, %v1608_v34  ;;  %v772_v19 = vpop.f32.mrf.mxu3  ;;  %v1183_v26 = vpop.eup %1182 }
 0x209   :  { %v773_v21 = vadd.f32 %v772_v19, %v1608_v34  ;;  %v942_v31 = vsel %vm940_vm9, %v851_v22, %v937_v20  ;;  %v1185_v32 = vpop.eup %1184  ;;  %v869_v33 = vmul.f32 %v1183_v26, %v1623_v30  ;;  %vm874_vm5 = vweird.f32 %v1183_v26 }
 0x20a   :  { %v1127_v28 = vmul.f32 -1.442695, %v760_v18  ;;  %950 = vst [vmem:[#allocation2 + $0x8] sm:$0x77] %v942_v31  ;;  %v884_v36 = vmul.f32 %v1185_v32, %v805_v10  ;;  %vm889_vm3 = vweird.f32 %v1185_v32  ;;  %vm875_vm8 = vmor %vm873_vm7, %vm874_vm5 }
 0x20b   :  { %v1128_v35 = vmul.f32 -1.442695, %v773_v21  ;;  %v870_v37 = vsub.f32 1.0, %v869_v33  ;;  %vm890_vm6 = vmor %vm888_vm4, %vm889_vm3 }
 0x20c   :  { %1186 = vpow2.f32 %v1127_v28  ;;  %v885_v38 = vsub.f32 1.0, %v884_v36 }
 0x20d   :  { %1188 = vpow2.f32 %v1128_v35  ;;  %v871_v39 = vmul.f32 %v1183_v26, %v870_v37 }
 0x20e   :  { %v886_v41 = vmul.f32 %v1185_v32, %v885_v38 }
 0x20f   :  { %v761_v40 = vpop.f32.mrf.mxu2  ;;  %v872_v44 = vadd.f32 %v1183_v26, %v871_v39 }
 0x210   :  { %v774_v34 = vpop.f32.mrf.mxu3  ;;  %v887_v45 = vadd.f32 %v1185_v32, %v886_v41 }
 0x211   :  { %v876_v55 = vsel %vm875_vm8, %v1183_v26, %v872_v44 }
 0x212   :  { %v1187_v43 = vpop.eup %1186  ;;  %v891_v52 = vsel %vm890_vm6, %v1185_v32, %v887_v45  ;;  %v881_v59 = vsel %vm878_vm11, %v880_v56, %v876_v55 }
 0x213   :  { %v1189_v47 = vpop.eup %1188  ;;  %v806_v49 = vadd.f32 1.0, %v1187_v43  ;;  %v896_v57 = vsel %vm893_vm10, %v895_v53, %v891_v52 }
 0x214   :  { %v807_v51 = vadd.f32 1.0, %v1189_v47  ;;  %v938_v58 = vrot.slane %v896_v57, 4 }
 0x215   :  { %1190 = vrcp.f32 %v806_v49  ;;  %vm903_vm14 = vweird.f32 %v806_v49  ;;  %v909_v5 = vand.u32 2147483648, %v806_v49  ;;  %v907_v7 = vand.u32 2147483647, %v806_v49 }
 0x216   :  { %1192 = vrcp.f32 %v807_v51  ;;  %v943_v15 = vsel %vm940_vm9, %v881_v59, %v938_v58  ;;  %v924_v2 = vand.u32 2147483648, %v807_v51  ;;  %v922_v25 = vand.u32 2147483647, %v807_v51 }
 0x217   :  { %951 = vst [vmem:[#allocation2 + $0x10] sm:$0x77] %v943_v15  ;;  %vm918_vm0 = vweird.f32 %v807_v51  ;;  %v910_v23 = vor.u32 1.1754944e-38, %v909_v5  ;;  %vm908_vm3 = vcmp.eq.f32.partialorder %v907_v7, 8.507059e+37 }
 0x218   :  { %v925_v29 = vor.u32 1.1754944e-38, %v924_v2  ;;  %vm923_vm2 = vcmp.eq.f32.partialorder %v922_v25, 8.507059e+37 }
 0x21b   :  { %v1191_v60 = vpop.eup %1190 }
 0x21c   :  { %v1193_v61 = vpop.eup %1192  ;;  %v899_v62 = vmul.f32 %v1191_v60, %v806_v49  ;;  %vm904_vm12 = vweird.f32 %v1191_v60 }
 0x21d   :  { %v914_v63 = vmul.f32 %v1193_v61, %v807_v51  ;;  %vm919_vm13 = vweird.f32 %v1193_v61  ;;  %vm1640_vm15 = vmor %vm903_vm14, %vm904_vm12 }
 0x21e   :  { %v900_v0 = vsub.f32 1.0, %v899_v62  ;;  %vm920_vm1 = vmor %vm918_vm0, %vm919_vm13 }
 0x21f   :  { %v915_v24 = vsub.f32 1.0, %v914_v63 }
 0x220   :  { %v901_v1 = vmul.f32 %v1191_v60, %v900_v0 }
 0x221   :  { %v916_v27 = vmul.f32 %v1193_v61, %v915_v24 }
 0x222   :  { %v902_v3 = vadd.f32 %v1191_v60, %v901_v1 }
 0x223   :  { %v917_v8 = vadd.f32 %v1193_v61, %v916_v27 }
 0x224   :  { %v906_v30 = vsel %vm1640_vm15, %v1191_v60, %v902_v3 }
 0x225   :  { %v921_v9 = vsel %vm920_vm1, %v1193_v61, %v917_v8  ;;  %v911_v12 = vsel %vm908_vm3, %v910_v23, %v906_v30 }
 0x226   :  { %v926_v10 = vsel %vm923_vm2, %v925_v29, %v921_v9 }
 0x227   :  { %v939_v11 = vrot.slane %v926_v10, 4 }
 0x229   :  { %v944_v13 = vsel %vm940_vm9, %v911_v12, %v939_v11 }
 0x22a   :  { %952 = vst [vmem:[#allocation2 + $0x18] sm:$0x77] %v944_v13 }
 0x22b   :  { %963 = dma.vmem_to_hbm [thread:$0]  %s959_s27, 512, %s961_s30, [#allocation3]  }
 0x22c   :  { %1218 = dma.done.wait [#allocation3], 512  }
 0x22d   :  { %1219 = vsyncadd [#allocation3], 4294966784 }
 0x22e   :  { %968 = vsyncpa [#allocation3], 1 }

</bundles_post_ra>
